<compile_context>
chip_gen: v7x
topology: tpu7x:2x2x1
jax: 0.10.0
libtpu: 0.0.40
codegen_flags: <defaults>
</compile_context>

<pallas_src>
import functools

import jax
import jax.numpy as jnp
from jax.experimental import pallas as pl
from jax.experimental.pallas import tpu as pltpu


def _layernorm(x, gamma, beta, eps=1e-5):
    mu = jnp.mean(x, axis=-1, keepdims=True)
    var = jnp.mean(jnp.square(x - mu), axis=-1, keepdims=True)
    return (x - mu) * jax.lax.rsqrt(var + eps) * gamma + beta


def new_encoder_kernel(x_ref, wqkv_ref, bqkv_ref, g1_ref, be1_ref,
                       wa_ref, ba_ref, qv_ref, g2_ref, be2_ref,
                       o_ref, *, num_heads, matmul_dtype):
    # F.dropout(p=0.2) is identity in eval mode.
    x = x_ref[...]                                          # [BT, S, Dw] f32
    bt, seq, dw = x.shape
    xf = x.reshape(bt * seq, dw).astype(matmul_dtype)       # major-dim reshape

    # ---- fused QKV projection: ONE MXU matmul, f32 accumulation ----------
    qkv = jnp.dot(xf, wqkv_ref[...],
                  preferred_element_type=jnp.float32) + bqkv_ref[...]  # [BT*S, 3*md]
    md = qkv.shape[-1] // 3
    dk = md // num_heads
    scale = 1.0 / float(dk) ** 0.5
    qkv3 = qkv.reshape(bt, seq, 3 * md)                     # major-dim reshape

    # ---- fold heads into the leading batch axis ---------------------------
    # Static lane slices stacked along axis 0 (tile copies, no minor-dim
    # transpose) -> a single batched score einsum + single softmax + single
    # PV einsum for all heads.
    def head_stack(base):
        return jnp.concatenate(
            [qkv3[:, :, base + h * dk: base + (h + 1) * dk]
             for h in range(num_heads)], axis=0)            # [nh*BT, S, dk]

    qh = head_stack(0)
    kh = head_stack(md)
    vh = head_stack(2 * md)

    s = jnp.einsum('bsd,btd->bst', qh, kh,
                   preferred_element_type=jnp.float32) * scale     # [nh*BT, S, S]
    s = s - jnp.max(s, axis=-1, keepdims=True)
    p = jnp.exp(s)
    p = p * pl.reciprocal(jnp.sum(p, axis=-1, keepdims=True), approx=True)
    oh = jnp.einsum('bst,btd->bsd',
                    p.astype(matmul_dtype), vh.astype(matmul_dtype),
                    preferred_element_type=jnp.float32)             # [nh*BT, S, dk]
    attn = jnp.concatenate(
        [oh[h * bt:(h + 1) * bt] for h in range(num_heads)], axis=-1)  # [BT, S, md]

    # ---- norm1 ------------------------------------------------------------
    h1 = _layernorm(attn, g1_ref[...], be1_ref[...])        # [BT, S, md] f32

    # ---- additive (query-vector) attention over the sequence --------------
    projf = jnp.tanh(
        jnp.dot(h1.reshape(bt * seq, md).astype(matmul_dtype), wa_ref[...],
                preferred_element_type=jnp.float32) + ba_ref[...])  # [BT*S, Qd]
    proj3 = projf.reshape(bt, seq, -1)                      # [BT, S, Qd]
    # VPU multiply + lane reduce against the broadcast query-vector row;
    # scores kept 2-D [BT, S] (S on lanes) through max/exp/sum.
    scores = jnp.sum(proj3 * qv_ref[...], axis=-1)          # [BT, S]
    scores = scores - jnp.max(scores, axis=-1, keepdims=True)
    w = jnp.exp(scores)
    w = w * (1.0 / jnp.sum(w, axis=-1, keepdims=True))      # exact; denom is tiny
    rep = jnp.sum(h1 * w[:, :, None], axis=1)               # [BT, md]

    # ---- norm2 + one dense batched store -----------------------------------
    o_ref[...] = _layernorm(rep, g2_ref[...], be2_ref[...])


def new_encoder_forward(x, params, num_heads, *, block_b=64,
                        matmul_dtype=jnp.bfloat16):
    B, S, Dw = x.shape
    md = params["wq"].shape[1]
    qd = params["wa"].shape[1]

    # BT sizing: keep the lane-padded working set small (~10 MiB at BT=64)
    # and, for B >= 16, make n_blocks >= 2 so the "parallel" batch axis can
    # shard across v7x's two TensorCores.
    if B >= 16:
        bt = min(block_b, ((B + 1) // 2 + 7) // 8 * 8)
    else:
        bt = min(block_b, B)
    n_blocks = pl.cdiv(B, bt)
    Bp = n_blocks * bt
    if Bp != B:
        x = jnp.pad(x, ((0, Bp - B), (0, 0), (0, 0)))       # zero rows, sliced off

    # Fuse QKV weights/biases wrapper-side; weights carried in matmul dtype.
    wqkv = jnp.concatenate(
        [params["wq"], params["wk"], params["wv"]], axis=1).astype(matmul_dtype)
    bqkv = jnp.concatenate([params["bq"], params["bk"], params["bv"]], axis=1)
    wa = params["wa"].astype(matmul_dtype)
    qv_row = params["qv"].reshape(1, qd)                    # (Qd,1) -> broadcast row

    full2 = lambda b: (0, 0)
    out = pl.pallas_call(
        functools.partial(new_encoder_kernel, num_heads=num_heads,
                          matmul_dtype=matmul_dtype),
        out_shape=jax.ShapeDtypeStruct((Bp, md), jnp.float32),
        grid_spec=pltpu.PrefetchScalarGridSpec(
            num_scalar_prefetch=0,
            grid=(n_blocks,),
            in_specs=[
                pl.BlockSpec((bt, S, Dw), lambda b: (b, 0, 0)),   # x batch tile
                pl.BlockSpec((Dw, 3 * md), full2),                # fused Wqkv
                pl.BlockSpec((1, 3 * md), full2),                 # fused bqkv
                pl.BlockSpec((1, md), full2),                     # norm1 gamma
                pl.BlockSpec((1, md), full2),                     # norm1 beta
                pl.BlockSpec((md, qd), full2),                    # Wa
                pl.BlockSpec((1, qd), full2),                     # ba
                pl.BlockSpec((1, qd), full2),                     # query vector row
                pl.BlockSpec((1, md), full2),                     # norm2 gamma
                pl.BlockSpec((1, md), full2),                     # norm2 beta
            ],
            out_specs=pl.BlockSpec((bt, md), lambda b: (b, 0)),
        ),
        compiler_params=pltpu.CompilerParams(
            dimension_semantics=("parallel",),
            vmem_limit_bytes=32 * 1024 * 1024),
    )(x, wqkv, bqkv, params["g1"], params["be1"],
      wa, params["ba"], qv_row, params["g2"], params["be2"])
    return out[:B]


# ---------------- pure-JAX reference (validation only) ----------------
def new_encoder_reference(x, p, num_heads):
    q = x @ p["wq"] + p["bq"]
    k = x @ p["wk"] + p["bk"]
    v = x @ p["wv"] + p["bv"]
    B, S, md = q.shape
    dk = md // num_heads
    qh = q.reshape(B, S, num_heads, dk).transpose(0, 2, 1, 3)
    kh = k.reshape(B, S, num_heads, dk).transpose(0, 2, 1, 3)
    vh = v.reshape(B, S, num_heads, dk).transpose(0, 2, 1, 3)
    s = jnp.einsum("bhsd,bhtd->bhst", qh, kh) / jnp.sqrt(dk).astype(jnp.float32)
    a = jax.nn.softmax(s, axis=-1)
    o = jnp.einsum("bhst,bhtd->bhsd", a, vh).transpose(0, 2, 1, 3).reshape(B, S, md)
    h1 = _layernorm(o, p["g1"], p["be1"])
    proj = jnp.tanh(h1 @ p["wa"] + p["ba"])
    sc = jnp.squeeze(proj @ p["qv"], -1)
    w = jax.nn.softmax(sc, axis=1)[..., None]
    rep = jnp.sum(w * h1, axis=1)
    return _layernorm(rep, p["g2"], p["be2"])


def init_params(key, word_dim, attention_dim, attention_heads, query_vector_dim):
    multi_dim = attention_dim * attention_heads
    ks = jax.random.split(key, 8)
    f32 = jnp.float32
    return {
        "wq": jax.random.normal(ks[0], (word_dim, multi_dim), f32) * 0.1,
        "bq": jax.random.normal(ks[1], (1, multi_dim), f32) * 0.01,
        "wk": jax.random.normal(ks[2], (word_dim, multi_dim), f32) * 0.1,
        "bk": jax.random.normal(ks[3], (1, multi_dim), f32) * 0.01,
        "wv": jax.random.normal(ks[4], (word_dim, multi_dim), f32) * 0.1,
        "bv": jax.random.normal(ks[5], (1, multi_dim), f32) * 0.01,
        "g1": jnp.ones((1, multi_dim), f32),
        "be1": jnp.zeros((1, multi_dim), f32),
        "wa": jax.random.normal(ks[6], (multi_dim, query_vector_dim), f32) * 0.1,
        "ba": jnp.zeros((1, query_vector_dim), f32),
        "qv": jax.random.normal(ks[7], (query_vector_dim, 1), f32) * 0.1,
        "g2": jnp.ones((1, multi_dim), f32),
        "be2": jnp.zeros((1, multi_dim), f32),
    }


if __name__ == "__main__":
    # small shapes consistent with the module
    B, S = 2, 8
    word_dim, attention_dim, attention_heads, query_vector_dim = 32, 8, 4, 16

    key = jax.random.PRNGKey(0)
    kx, kp = jax.random.split(key)
    x = jax.random.normal(kx, (B, S, word_dim), jnp.float32)
    params = init_params(kp, word_dim, attention_dim, attention_heads,
                         query_vector_dim)

    ref = new_encoder_reference(x, params, attention_heads)

    # 1) f32 MXU path: validates kernel structure tightly (only the approx
    #    EUP reciprocal in the MHA softmax deviates, rel err ~2^-12).
    out_f32 = jax.block_until_ready(
        new_encoder_forward(x, params, attention_heads,
                            matmul_dtype=jnp.float32))
    assert out_f32.shape == (B, attention_dim * attention_heads)
    assert jnp.allclose(out_f32, ref, rtol=1e-2, atol=1e-2), "f32 path mismatch"

    # 2) bf16 MXU path (production default): the two LayerNorms renormalize
    #    to unit scale, so bf16 operand rounding shows up as up to a few e-2
    #    absolute error vs the pure-f32 reference.
    out_bf16 = jax.block_until_ready(
        new_encoder_forward(x, params, attention_heads))
    assert out_bf16.shape == (B, attention_dim * attention_heads)
    assert jnp.allclose(out_bf16, ref, rtol=1e-1, atol=1e-1), "bf16 path mismatch"

    print("KERNEL_OK")
</pallas_src>

<mosaic_0001>
module attributes {stable_mosaic.version = 11 : i64} {
  func.func @new_encoder_kernel(%arg0: i32, %arg1: memref<2x8x32xf32, #tpu.memory_space<vmem>>, %arg2: memref<32x96xf32, #tpu.memory_space<vmem>>, %arg3: memref<1x96xf32, #tpu.memory_space<vmem>>, %arg4: memref<1x32xf32, #tpu.memory_space<vmem>>, %arg5: memref<1x32xf32, #tpu.memory_space<vmem>>, %arg6: memref<32x16xf32, #tpu.memory_space<vmem>>, %arg7: memref<1x16xf32, #tpu.memory_space<vmem>>, %arg8: memref<1x16xf32, #tpu.memory_space<vmem>>, %arg9: memref<1x32xf32, #tpu.memory_space<vmem>>, %arg10: memref<1x32xf32, #tpu.memory_space<vmem>>, %arg11: memref<2x32xf32, #tpu.memory_space<vmem>>) attributes {dimension_semantics = [#tpu.dimension_semantics<parallel>], iteration_bounds = array<i64: 1>, scalar_prefetch = 0 : i64, scratch_operands = 0 : i64, tpu.core_type = #tpu.core_type<tc>, window_params = [{transform_indices = @transform_0, window_bounds = array<i64: 2, 8, 32>}, {pipeline_mode = #tpu.pipeline_mode<synchronous>, transform_indices = @transform_1, window_bounds = array<i64: 32, 96>}, {pipeline_mode = #tpu.pipeline_mode<synchronous>, transform_indices = @transform_2, window_bounds = array<i64: 1, 96>}, {pipeline_mode = #tpu.pipeline_mode<synchronous>, transform_indices = @transform_3, window_bounds = array<i64: 1, 32>}, {pipeline_mode = #tpu.pipeline_mode<synchronous>, transform_indices = @transform_4, window_bounds = array<i64: 1, 32>}, {pipeline_mode = #tpu.pipeline_mode<synchronous>, transform_indices = @transform_5, window_bounds = array<i64: 32, 16>}, {pipeline_mode = #tpu.pipeline_mode<synchronous>, transform_indices = @transform_6, window_bounds = array<i64: 1, 16>}, {pipeline_mode = #tpu.pipeline_mode<synchronous>, transform_indices = @transform_7, window_bounds = array<i64: 1, 16>}, {pipeline_mode = #tpu.pipeline_mode<synchronous>, transform_indices = @transform_8, window_bounds = array<i64: 1, 32>}, {pipeline_mode = #tpu.pipeline_mode<synchronous>, transform_indices = @transform_9, window_bounds = array<i64: 1, 32>}, {transform_indices = @transform_10, window_bounds = array<i64: 2, 32>}]} {
    %c0 = arith.constant 0 : index
    %c0_0 = arith.constant 0 : index
    %c0_1 = arith.constant 0 : index
    %0 = vector.load %arg1[%c0, %c0_0, %c0_1] : memref<2x8x32xf32, #tpu.memory_space<vmem>>, vector<2x8x32xf32>
    %1 = vector.shape_cast %0 : vector<2x8x32xf32> to vector<16x32xf32>
    %c0_2 = arith.constant 0 : index
    %c0_3 = arith.constant 0 : index
    %2 = vector.load %arg2[%c0_2, %c0_3] : memref<32x96xf32, #tpu.memory_space<vmem>>, vector<32x96xf32>
    %cst = arith.constant dense<0.000000e+00> : vector<16x96xf32>
    %3 = tpu.matmul %1, %2, %cst {dimension_numbers = #tpu.dot_dimension_numbers<[1], [0], [0], [1], [0, 0, 1, 1], [], []>} : vector<16x32xf32>, vector<32x96xf32>, vector<16x96xf32> -> vector<16x96xf32>
    %c0_4 = arith.constant 0 : index
    %c0_5 = arith.constant 0 : index
    %4 = vector.load %arg3[%c0_4, %c0_5] : memref<1x96xf32, #tpu.memory_space<vmem>>, vector<1x96xf32>
    %5 = vector.broadcast %4 : vector<1x96xf32> to vector<16x96xf32>
    %6 = arith.addf %3, %5 : vector<16x96xf32>
    %7 = vector.shape_cast %6 : vector<16x96xf32> to vector<2x8x96xf32>
    %8 = vector.extract_strided_slice %7 {offsets = [0, 0, 0], sizes = [2, 8, 8], strides = [1, 1, 1]} : vector<2x8x96xf32> to vector<2x8x8xf32>
    %9 = vector.extract_strided_slice %7 {offsets = [0, 0, 8], sizes = [2, 8, 8], strides = [1, 1, 1]} : vector<2x8x96xf32> to vector<2x8x8xf32>
    %10 = vector.extract_strided_slice %7 {offsets = [0, 0, 16], sizes = [2, 8, 8], strides = [1, 1, 1]} : vector<2x8x96xf32> to vector<2x8x8xf32>
    %11 = vector.extract_strided_slice %7 {offsets = [0, 0, 24], sizes = [2, 8, 8], strides = [1, 1, 1]} : vector<2x8x96xf32> to vector<2x8x8xf32>
    %12 = tpu.concatenate %8, %9, %10, %11 in 0 : vector<2x8x8xf32>, vector<2x8x8xf32>, vector<2x8x8xf32>, vector<2x8x8xf32> -> vector<8x8x8xf32>
    %13 = vector.extract_strided_slice %7 {offsets = [0, 0, 32], sizes = [2, 8, 8], strides = [1, 1, 1]} : vector<2x8x96xf32> to vector<2x8x8xf32>
    %14 = vector.extract_strided_slice %7 {offsets = [0, 0, 40], sizes = [2, 8, 8], strides = [1, 1, 1]} : vector<2x8x96xf32> to vector<2x8x8xf32>
    %15 = vector.extract_strided_slice %7 {offsets = [0, 0, 48], sizes = [2, 8, 8], strides = [1, 1, 1]} : vector<2x8x96xf32> to vector<2x8x8xf32>
    %16 = vector.extract_strided_slice %7 {offsets = [0, 0, 56], sizes = [2, 8, 8], strides = [1, 1, 1]} : vector<2x8x96xf32> to vector<2x8x8xf32>
    %17 = tpu.concatenate %13, %14, %15, %16 in 0 : vector<2x8x8xf32>, vector<2x8x8xf32>, vector<2x8x8xf32>, vector<2x8x8xf32> -> vector<8x8x8xf32>
    %18 = vector.extract_strided_slice %7 {offsets = [0, 0, 64], sizes = [2, 8, 8], strides = [1, 1, 1]} : vector<2x8x96xf32> to vector<2x8x8xf32>
    %19 = vector.extract_strided_slice %7 {offsets = [0, 0, 72], sizes = [2, 8, 8], strides = [1, 1, 1]} : vector<2x8x96xf32> to vector<2x8x8xf32>
    %20 = vector.extract_strided_slice %7 {offsets = [0, 0, 80], sizes = [2, 8, 8], strides = [1, 1, 1]} : vector<2x8x96xf32> to vector<2x8x8xf32>
    %21 = vector.extract_strided_slice %7 {offsets = [0, 0, 88], sizes = [2, 8, 8], strides = [1, 1, 1]} : vector<2x8x96xf32> to vector<2x8x8xf32>
    %22 = tpu.concatenate %18, %19, %20, %21 in 0 : vector<2x8x8xf32>, vector<2x8x8xf32>, vector<2x8x8xf32>, vector<2x8x8xf32> -> vector<8x8x8xf32>
    "tpu.trace_start"() <{level = 10 : i32, message = "bsd,btd->bst"}> : () -> ()
    %cst_6 = arith.constant dense<0.000000e+00> : vector<8x8x8xf32>
    %23 = tpu.matmul %12, %17, %cst_6 {dimension_numbers = #tpu.dot_dimension_numbers<[2], [2], [1], [1], [0, 0, 0, 1, 1, 1], [0], [0]>} : vector<8x8x8xf32>, vector<8x8x8xf32>, vector<8x8x8xf32> -> vector<8x8x8xf32>
    "tpu.trace_stop"() : () -> ()
    %cst_7 = arith.constant 0.353553385 : f32
    %24 = vector.broadcast %cst_7 : f32 to vector<8x8x8xf32>
    %25 = arith.mulf %23, %24 : vector<8x8x8xf32>
    %cst_8 = arith.constant dense<0xFF800000> : vector<8x8xf32>
    %26 = vector.multi_reduction <maximumf>, %25, %cst_8 [2] : vector<8x8x8xf32> to vector<8x8xf32>
    %27 = vector.shape_cast %26 : vector<8x8xf32> to vector<8x8x1xf32>
    %28 = vector.broadcast %27 : vector<8x8x1xf32> to vector<8x8x8xf32>
    %29 = arith.subf %25, %28 : vector<8x8x8xf32>
    %30 = math.exp %29 : vector<8x8x8xf32>
    %cst_9 = arith.constant dense<0.000000e+00> : vector<8x8xf32>
    %31 = vector.multi_reduction <add>, %30, %cst_9 [2] : vector<8x8x8xf32> to vector<8x8xf32>
    %32 = vector.shape_cast %31 : vector<8x8xf32> to vector<8x8x1xf32>
    %33 = tpu.reciprocal %32 {approx = true} : vector<8x8x1xf32> -> vector<8x8x1xf32>
    %34 = vector.broadcast %33 : vector<8x8x1xf32> to vector<8x8x8xf32>
    %35 = arith.mulf %30, %34 : vector<8x8x8xf32>
    "tpu.trace_start"() <{level = 10 : i32, message = "bst,btd->bsd"}> : () -> ()
    %cst_10 = arith.constant dense<0.000000e+00> : vector<8x8x8xf32>
    %36 = tpu.matmul %35, %22, %cst_10 {dimension_numbers = #tpu.dot_dimension_numbers<[2], [1], [1], [2], [0, 0, 0, 1, 1, 2], [0], [0]>} : vector<8x8x8xf32>, vector<8x8x8xf32>, vector<8x8x8xf32> -> vector<8x8x8xf32>
    "tpu.trace_stop"() : () -> ()
    %37 = vector.extract_strided_slice %36 {offsets = [0, 0, 0], sizes = [2, 8, 8], strides = [1, 1, 1]} : vector<8x8x8xf32> to vector<2x8x8xf32>
    %38 = vector.extract_strided_slice %36 {offsets = [2, 0, 0], sizes = [2, 8, 8], strides = [1, 1, 1]} : vector<8x8x8xf32> to vector<2x8x8xf32>
    %39 = vector.extract_strided_slice %36 {offsets = [4, 0, 0], sizes = [2, 8, 8], strides = [1, 1, 1]} : vector<8x8x8xf32> to vector<2x8x8xf32>
    %40 = vector.extract_strided_slice %36 {offsets = [6, 0, 0], sizes = [2, 8, 8], strides = [1, 1, 1]} : vector<8x8x8xf32> to vector<2x8x8xf32>
    %41 = tpu.concatenate %37, %38, %39, %40 in 2 : vector<2x8x8xf32>, vector<2x8x8xf32>, vector<2x8x8xf32>, vector<2x8x8xf32> -> vector<2x8x32xf32>
    %c0_11 = arith.constant 0 : index
    %c0_12 = arith.constant 0 : index
    %42 = vector.load %arg4[%c0_11, %c0_12] : memref<1x32xf32, #tpu.memory_space<vmem>>, vector<1x32xf32>
    %c0_13 = arith.constant 0 : index
    %c0_14 = arith.constant 0 : index
    %43 = vector.load %arg5[%c0_13, %c0_14] : memref<1x32xf32, #tpu.memory_space<vmem>>, vector<1x32xf32>
    %cst_15 = arith.constant dense<0.000000e+00> : vector<2x8xf32>
    %44 = vector.multi_reduction <add>, %41, %cst_15 [2] : vector<2x8x32xf32> to vector<2x8xf32>
    %45 = vector.shape_cast %44 : vector<2x8xf32> to vector<2x8x1xf32>
    %cst_16 = arith.constant 3.200000e+01 : f32
    %46 = vector.broadcast %cst_16 : f32 to vector<2x8x1xf32>
    %47 = arith.divf %45, %46 : vector<2x8x1xf32>
    %48 = vector.broadcast %47 : vector<2x8x1xf32> to vector<2x8x32xf32>
    %49 = arith.subf %41, %48 : vector<2x8x32xf32>
    %50 = arith.mulf %49, %49 : vector<2x8x32xf32>
    %cst_17 = arith.constant dense<0.000000e+00> : vector<2x8xf32>
    %51 = vector.multi_reduction <add>, %50, %cst_17 [2] : vector<2x8x32xf32> to vector<2x8xf32>
    %52 = vector.shape_cast %51 : vector<2x8xf32> to vector<2x8x1xf32>
    %cst_18 = arith.constant 3.200000e+01 : f32
    %53 = vector.broadcast %cst_18 : f32 to vector<2x8x1xf32>
    %54 = arith.divf %52, %53 : vector<2x8x1xf32>
    %55 = vector.broadcast %47 : vector<2x8x1xf32> to vector<2x8x32xf32>
    %56 = arith.subf %41, %55 : vector<2x8x32xf32>
    %cst_19 = arith.constant 9.99999974E-6 : f32
    %57 = vector.broadcast %cst_19 : f32 to vector<2x8x1xf32>
    %58 = arith.addf %54, %57 : vector<2x8x1xf32>
    %59 = math.rsqrt %58 : vector<2x8x1xf32>
    %60 = vector.broadcast %59 : vector<2x8x1xf32> to vector<2x8x32xf32>
    %61 = arith.mulf %56, %60 : vector<2x8x32xf32>
    %62 = vector.shape_cast %42 : vector<1x32xf32> to vector<1x1x32xf32>
    %63 = vector.broadcast %62 : vector<1x1x32xf32> to vector<2x8x32xf32>
    %64 = arith.mulf %61, %63 : vector<2x8x32xf32>
    %65 = vector.shape_cast %43 : vector<1x32xf32> to vector<1x1x32xf32>
    %66 = vector.broadcast %65 : vector<1x1x32xf32> to vector<2x8x32xf32>
    %67 = arith.addf %64, %66 : vector<2x8x32xf32>
    %68 = vector.shape_cast %67 : vector<2x8x32xf32> to vector<16x32xf32>
    %c0_20 = arith.constant 0 : index
    %c0_21 = arith.constant 0 : index
    %69 = vector.load %arg6[%c0_20, %c0_21] : memref<32x16xf32, #tpu.memory_space<vmem>>, vector<32x16xf32>
    %cst_22 = arith.constant dense<0.000000e+00> : vector<16x16xf32>
    %70 = tpu.matmul %68, %69, %cst_22 {dimension_numbers = #tpu.dot_dimension_numbers<[1], [0], [0], [1], [0, 0, 1, 1], [], []>} : vector<16x32xf32>, vector<32x16xf32>, vector<16x16xf32> -> vector<16x16xf32>
    %c0_23 = arith.constant 0 : index
    %c0_24 = arith.constant 0 : index
    %71 = vector.load %arg7[%c0_23, %c0_24] : memref<1x16xf32, #tpu.memory_space<vmem>>, vector<1x16xf32>
    %72 = vector.broadcast %71 : vector<1x16xf32> to vector<16x16xf32>
    %73 = arith.addf %70, %72 : vector<16x16xf32>
    %74 = math.tanh %73 : vector<16x16xf32>
    %75 = vector.shape_cast %74 : vector<16x16xf32> to vector<2x8x16xf32>
    %c0_25 = arith.constant 0 : index
    %c0_26 = arith.constant 0 : index
    %76 = vector.load %arg8[%c0_25, %c0_26] : memref<1x16xf32, #tpu.memory_space<vmem>>, vector<1x16xf32>
    %77 = vector.shape_cast %76 : vector<1x16xf32> to vector<1x1x16xf32>
    %78 = vector.broadcast %77 : vector<1x1x16xf32> to vector<2x8x16xf32>
    %79 = arith.mulf %75, %78 : vector<2x8x16xf32>
    %cst_27 = arith.constant dense<0.000000e+00> : vector<2x8xf32>
    %80 = vector.multi_reduction <add>, %79, %cst_27 [2] : vector<2x8x16xf32> to vector<2x8xf32>
    %cst_28 = arith.constant dense<0xFF800000> : vector<2xf32>
    %81 = vector.multi_reduction <maximumf>, %80, %cst_28 [1] : vector<2x8xf32> to vector<2xf32>
    %82 = vector.shape_cast %81 : vector<2xf32> to vector<2x1xf32>
    %83 = vector.broadcast %82 : vector<2x1xf32> to vector<2x8xf32>
    %84 = arith.subf %80, %83 : vector<2x8xf32>
    %85 = math.exp %84 : vector<2x8xf32>
    %cst_29 = arith.constant dense<0.000000e+00> : vector<2xf32>
    %86 = vector.multi_reduction <add>, %85, %cst_29 [1] : vector<2x8xf32> to vector<2xf32>
    %87 = vector.shape_cast %86 : vector<2xf32> to vector<2x1xf32>
    %cst_30 = arith.constant 1.000000e+00 : f32
    %88 = vector.broadcast %cst_30 : f32 to vector<2x1xf32>
    %89 = arith.divf %88, %87 : vector<2x1xf32>
    %90 = vector.broadcast %89 : vector<2x1xf32> to vector<2x8xf32>
    %91 = arith.mulf %85, %90 : vector<2x8xf32>
    %92 = vector.shape_cast %91 : vector<2x8xf32> to vector<2x8x1xf32>
    %93 = vector.broadcast %92 : vector<2x8x1xf32> to vector<2x8x32xf32>
    %94 = arith.mulf %67, %93 : vector<2x8x32xf32>
    %cst_31 = arith.constant dense<0.000000e+00> : vector<2x32xf32>
    %95 = vector.multi_reduction <add>, %94, %cst_31 [1] : vector<2x8x32xf32> to vector<2x32xf32>
    %c0_32 = arith.constant 0 : index
    %c0_33 = arith.constant 0 : index
    %96 = vector.load %arg9[%c0_32, %c0_33] : memref<1x32xf32, #tpu.memory_space<vmem>>, vector<1x32xf32>
    %c0_34 = arith.constant 0 : index
    %c0_35 = arith.constant 0 : index
    %97 = vector.load %arg10[%c0_34, %c0_35] : memref<1x32xf32, #tpu.memory_space<vmem>>, vector<1x32xf32>
    %cst_36 = arith.constant dense<0.000000e+00> : vector<2xf32>
    %98 = vector.multi_reduction <add>, %95, %cst_36 [1] : vector<2x32xf32> to vector<2xf32>
    %99 = vector.shape_cast %98 : vector<2xf32> to vector<2x1xf32>
    %cst_37 = arith.constant 3.200000e+01 : f32
    %100 = vector.broadcast %cst_37 : f32 to vector<2x1xf32>
    %101 = arith.divf %99, %100 : vector<2x1xf32>
    %102 = vector.broadcast %101 : vector<2x1xf32> to vector<2x32xf32>
    %103 = arith.subf %95, %102 : vector<2x32xf32>
    %104 = arith.mulf %103, %103 : vector<2x32xf32>
    %cst_38 = arith.constant dense<0.000000e+00> : vector<2xf32>
    %105 = vector.multi_reduction <add>, %104, %cst_38 [1] : vector<2x32xf32> to vector<2xf32>
    %106 = vector.shape_cast %105 : vector<2xf32> to vector<2x1xf32>
    %cst_39 = arith.constant 3.200000e+01 : f32
    %107 = vector.broadcast %cst_39 : f32 to vector<2x1xf32>
    %108 = arith.divf %106, %107 : vector<2x1xf32>
    %109 = vector.broadcast %101 : vector<2x1xf32> to vector<2x32xf32>
    %110 = arith.subf %95, %109 : vector<2x32xf32>
    %cst_40 = arith.constant 9.99999974E-6 : f32
    %111 = vector.broadcast %cst_40 : f32 to vector<2x1xf32>
    %112 = arith.addf %108, %111 : vector<2x1xf32>
    %113 = math.rsqrt %112 : vector<2x1xf32>
    %114 = vector.broadcast %113 : vector<2x1xf32> to vector<2x32xf32>
    %115 = arith.mulf %110, %114 : vector<2x32xf32>
    %116 = vector.broadcast %96 : vector<1x32xf32> to vector<2x32xf32>
    %117 = arith.mulf %115, %116 : vector<2x32xf32>
    %118 = vector.broadcast %97 : vector<1x32xf32> to vector<2x32xf32>
    %119 = arith.addf %117, %118 : vector<2x32xf32>
    %c0_41 = arith.constant 0 : index
    %c0_42 = arith.constant 0 : index
    %120 = vector.load %arg11[%c0_41, %c0_42] : memref<2x32xf32, #tpu.memory_space<vmem>>, vector<2x32xf32>
    tpu.vector_store %arg11[%c0_41, %c0_42], %119 {strides = array<i32>} : memref<2x32xf32, #tpu.memory_space<vmem>>, vector<2x32xf32>,
    return
  }
  func.func @transform_0(%arg0: i32) -> (i32, i32, i32) {
    %c0_i32 = arith.constant 0 : i32
    %c0_i32_0 = arith.constant 0 : i32
    %c0_i32_1 = arith.constant 0 : i32
    return %arg0, %c0_i32, %c0_i32_0 : i32, i32, i32
  }
  func.func @transform_1(%arg0: i32) -> (i32, i32) {
    %c0_i32 = arith.constant 0 : i32
    %c0_i32_0 = arith.constant 0 : i32
    %c0_i32_1 = arith.constant 0 : i32
    return %c0_i32, %c0_i32_0 : i32, i32
  }
  func.func @transform_2(%arg0: i32) -> (i32, i32) {
    %c0_i32 = arith.constant 0 : i32
    %c0_i32_0 = arith.constant 0 : i32
    %c0_i32_1 = arith.constant 0 : i32
    return %c0_i32, %c0_i32_0 : i32, i32
  }
  func.func @transform_3(%arg0: i32) -> (i32, i32) {
    %c0_i32 = arith.constant 0 : i32
    %c0_i32_0 = arith.constant 0 : i32
    %c0_i32_1 = arith.constant 0 : i32
    return %c0_i32, %c0_i32_0 : i32, i32
  }
  func.func @transform_4(%arg0: i32) -> (i32, i32) {
    %c0_i32 = arith.constant 0 : i32
    %c0_i32_0 = arith.constant 0 : i32
    %c0_i32_1 = arith.constant 0 : i32
    return %c0_i32, %c0_i32_0 : i32, i32
  }
  func.func @transform_5(%arg0: i32) -> (i32, i32) {
    %c0_i32 = arith.constant 0 : i32
    %c0_i32_0 = arith.constant 0 : i32
    %c0_i32_1 = arith.constant 0 : i32
    return %c0_i32, %c0_i32_0 : i32, i32
  }
  func.func @transform_6(%arg0: i32) -> (i32, i32) {
    %c0_i32 = arith.constant 0 : i32
    %c0_i32_0 = arith.constant 0 : i32
    %c0_i32_1 = arith.constant 0 : i32
    return %c0_i32, %c0_i32_0 : i32, i32
  }
  func.func @transform_7(%arg0: i32) -> (i32, i32) {
    %c0_i32 = arith.constant 0 : i32
    %c0_i32_0 = arith.constant 0 : i32
    %c0_i32_1 = arith.constant 0 : i32
    return %c0_i32, %c0_i32_0 : i32, i32
  }
  func.func @transform_8(%arg0: i32) -> (i32, i32) {
    %c0_i32 = arith.constant 0 : i32
    %c0_i32_0 = arith.constant 0 : i32
    %c0_i32_1 = arith.constant 0 : i32
    return %c0_i32, %c0_i32_0 : i32, i32
  }
  func.func @transform_9(%arg0: i32) -> (i32, i32) {
    %c0_i32 = arith.constant 0 : i32
    %c0_i32_0 = arith.constant 0 : i32
    %c0_i32_1 = arith.constant 0 : i32
    return %c0_i32, %c0_i32_0 : i32, i32
  }
  func.func @transform_10(%arg0: i32) -> (i32, i32) {
    %c0_i32 = arith.constant 0 : i32
    %c0_i32_0 = arith.constant 0 : i32
    return %arg0, %c0_i32 : i32, i32
  }
}

</mosaic_0001>

<bundles_post_ra>
// kernel: tpu_custom_call.1
= control target key start
LH: loop header
LB: loop body
LE: loop exit
PB: predicated region body
PF: predicated region fallthrough
CT: control target
= control target key end

     0   :  { %15 = vsyncpa [#allocation3], 0  ;;  %s2463_s0 = inlined_call_operand.vmem [shape: f32[2,8,32], index: 0, kind: input, shape index: {}]   ;;  %s2464_s1 = inlined_call_operand.vmem [shape: f32[32,96], index: 1, kind: input, shape index: {}]   ;;  %s2465_s2 = inlined_call_operand.vmem [shape: f32[1,96], index: 2, kind: input, shape index: {}]   ;;  %s2466_s3 = inlined_call_operand.vmem [shape: f32[1,32], index: 3, kind: input, shape index: {}]   ;;  %s2467_s4 = inlined_call_operand.hbm [shape: f32[1,32], index: 4, kind: input, shape index: {}]   ;;  %s2468_s5 = inlined_call_operand.vmem [shape: f32[32,16], index: 5, kind: input, shape index: {}]   ;;  %s2469_s6 = inlined_call_operand.vmem [shape: f32[1,16], index: 6, kind: input, shape index: {}]   ;;  %s2470_s7 = inlined_call_operand.vmem [shape: f32[1,16], index: 7, kind: input, shape index: {}]   ;;  %s2471_s8 = inlined_call_operand.vmem [shape: f32[1,32], index: 8, kind: input, shape index: {}]   ;;  %s2472_s9 = inlined_call_operand.vmem [shape: f32[1,32], index: 9, kind: input, shape index: {}]   ;;  %s2473_s10 = inlined_call_operand.hbm [shape: f32[2,32], index: 10, kind: output, shape index: {}]  }
   0x1   :  { %16 = vsyncpa [#allocation4], 0  ;;  %s2135_s13 = smov [#allocation2]   ;;  %s2087_s17 = scalar_lea.hbm %s2467_s4, 16 }
   0x2   :  { %s31_s14 = sshll.u32 %s2135_s13, 4  ;;  %p2088_p0 = scmp.ne.s32.totalorder %s2467_s4, %s2087_s17  ;;  %s32_s14 = int_to_ptr.vmem [resolvable:$true] %s31_s14 }
   0x3   :  { %p2091_p1 = scmp.lt.u32.totalorder %s2087_s17, %s2467_s4 }
   0x5   :  { %p2093_p2 = pnand %p2091_p1, %p2088_p0 }
   0x7   :  { %2096 = shalt.err (!%p2093_p2)
}
   0x8   :  { %s2097_s22 = scalar_lea.vmem %s32_s14, 16  ;;  %s2101_s23 = scalar_lea.vmem %s32_s14, 32 }
   0x9   :  { %p2098_p3 = scmp.ne.s32.totalorder %s32_s14, %s2097_s22  ;;  %p2102_p4 = scmp.lt.s32.totalorder %s32_s14, %s32_s14 }
   0xa   :  { %p2103_p5 = scmp.lt.s32.totalorder %s2101_s23, %s2097_s22 }
   0xc   :  { %p2104_p6 = por %p2103_p5, %p2102_p4 }
   0xe   :  { %p2105_p7 = pnand %p2104_p6, %p2098_p3 }
  0x10   :  { %2108 = shalt.err (!%p2105_p7)
}
  0x11   :  { %34 = dma.hbm_to_vmem [thread:$0]  %s2467_s4, 16, %s32_s14, [#allocation3]  }
  0x12   :  { %2131 = dma.done.wait [#allocation3], 16  }
  0x13   :  { %2132 = vsyncadd [#allocation3], 4294967280  ;;  %vm61_vm0 = vcmask 261120   ;;  %v50_v0 = vld [vmem:[%s2464_s1] sm:$0xff]  ;;  %v51_v1 = vld [vmem:[%s2464_s1 + $0x8] sm:$0xff]  ;;  %v2136_v10 = vmov 0.0  }
  0x14   :  { %v52_v2 = vld [vmem:[%s2464_s1 + $0x10] sm:$0xff]  ;;  %v2008_v3 = vpack.c.bf16 %v51_v1, %v50_v0  ;;  %v53_v4 = vld [vmem:[%s2464_s1 + $0x18] sm:$0xff]  ;;  %v48_v5 = vld [vmem:[%s2463_s0] sm:$0xff]  ;;  %1917 = vmatprep.subr.mxu1 %v2136_v10  ;;  %s2137_s1 = smov 112   ;;  %s2138_s19 = smov 120   ;;  %vm2139_vm1 = vmmov 0  }
  0x15   :  { %v2012_v6 = vpack.c.bf16 %v53_v4, %v52_v2  ;;  %1914 = vmatprep.mubr.msk.f32.mxu0 %vm61_vm0, %v48_v5  ;;  %v49_v7 = vld [vmem:[%s2463_s0 + $0x8] sm:$0xff]  ;;  %v1827_v8 = vld [vmem:[%s2465_s2] ss:$0 sm:$0xff]  ;;  %1919 = vmatprep.mubr.msk.f32.mxu1 %vm2139_vm1, %v2136_v10  ;;  %s2140_s0 = smov 104   ;;  %s2141_s2 = smov 96   ;;  %vm159_vm2 = vcmask 64512  }
  0x16   :  { %2009 = vmatprep.subr.bf16.mxu0 %v2008_v3  ;;  %s2142_s20 = smov 64   ;;  %s2143_s21 = smov 8   ;;  %vm1496_vm3 = vcmask 130048   ;;  %vm1499_vm4 = vcmask 195584   ;;  %vm1668_vm5 = vcmask 1041409   ;;  %vm1671_vm6 = vcmask 58368  }
  0x17   :  { %2011 = vmatpush3.bf16.msra.mxu0 %v2008_v3  ;;  %s2144_s22 = smov 16   ;;  %s2145_s23 = smov 24   ;;  %vm1760_vm7 = vcmask 254976  }
  0x18   :  { %2013 = vmatprep.subr.bf16.mxu0 %v2012_v6  ;;  %s2147_s17 = smov [#allocation5]  }
  0x19   :  { %s1818_s18 = sshll.u32 %s2147_s17, 4  ;;  %s1819_s18 = int_to_ptr.vmem [resolvable:$true] %s1818_s18 }
  0x1a   :  { %p2114_p9 = scmp.lt.s32.totalorder %s1819_s18, %s1819_s18 }
  0x1b   :  { %2015 = vmatpush3.bf16.msra.mxu0 %v2012_v6 }
  0x1c   :  { %1937 = vmatprep.subr.mxu0 %v2136_v10 }
  0x1e   :  { %1915 = vmatmul.mubr.msk.f32.vlgmr.msra.gmra.mrb[0].mxu0 %vm61_vm0, %v49_v7 }
  0x1f   :  { %1939 = vmatprep.mubr.msk.f32.mxu0 %vm2139_vm1, %v2136_v10 }
  0xf1   :  { %v1916_v9 = vpop.f32.mrb[0].mxu0 }
  0xf2   :  { %v134_v11 = vpop.f32.mrb[1].mxu0  ;;  %v2248_v13 = vadd.f32 %v1916_v9, %v1827_v8 }
  0xf3   :  { %v2240_v12 = vadd.f32 %v1827_v8, %v134_v11 }
  0xf5   :  { %149 = vrot.lane.b32.xlu1 %v2240_v12, %s2137_s1  ;;  %145 = vrot.lane.b32.xlu0 %v2240_v12, %s2138_s19 }
  0xf9   :  { %151 = vrot.lane.b32.xlu1 %v2248_v13, %s2137_s1  ;;  %147 = vrot.lane.b32.xlu0 %v2248_v13, %s2138_s19  ;;  %s2109_s1 = scalar_lea.vmem %s1819_s18, 32 }
  0xfa   :  { %p2110_p8 = scmp.ne.s32.totalorder %s1819_s18, %s2109_s1  ;;  %p2115_p10 = scmp.lt.s32.totalorder %s2109_s1, %s2109_s1 }
  0xfc   :  { %p2116_p11 = por %p2115_p10, %p2114_p9 }
  0xfd   :  { %155 = vrot.lane.b32.xlu1 %v2248_v13, %s2140_s0  ;;  %153 = vrot.lane.b32.xlu0 %v2240_v12, %s2140_s0 }
  0xfe   :  { %p2117_p12 = pnand %p2116_p11, %p2110_p8 }
 0x101   :  { %234 = vrot.lane.b32.xlu1 %v2248_v13, %s2141_s2  ;;  %157 = vrot.lane.b32.xlu0 %v2240_v12, %s2141_s2 }
 0x167   :  { %v2256_v14 = vpop.permute.xlu1 %149  ;;  %v2258_v15 = vpop.permute.xlu0 %145 }
 0x168   :  { %310 = vrot.lane.b32.xlu0 %v2258_v15, %s2141_s2 }
 0x16b   :  { %v2261_v16 = vpop.permute.xlu1 %151  ;;  %v2263_v17 = vpop.permute.xlu0 %147 }
 0x16c   :  { %462 = vrot.lane.b32.xlu0 %v2256_v14, %s2141_s2  ;;  %386 = vrot.lane.b32.xlu1 %v2263_v17, %s2141_s2 }
 0x16f   :  { %v2267_v18 = vpop.permute.xlu0 %153  ;;  %v2271_v19 = vpop.permute.xlu1 %155 }
 0x170   :  { %538 = vrot.lane.b32.xlu1 %v2261_v16, %s2141_s2  ;;  %614 = vrot.lane.b32.xlu0 %v2267_v18, %s2141_s2 }
 0x173   :  { %v158_v20 = vpop.permute.xlu0 %157  ;;  %v235_v21 = vpop.permute.xlu1 %234 }
 0x174   :  { %690 = vrot.lane.b32.xlu1 %v2271_v19, %s2141_s2  ;;  %1918 = vmatpush3.xpose.msk.msra.mxu1 %vm159_vm2, %v158_v20 }
 0x175   :  { %1922 = vmatprep.subr.mxu1 %v2136_v10 }
 0x177   :  { %1920 = vmatmul.mubr.msk.f32.vlgmr.msra.gmra.mrb[0].mxu1 %vm159_vm2, %v2240_v12 }
 0x178   :  { %1923 = vmatpush3.xpose.msk.msra.mxu1 %vm159_vm2, %v235_v21  ;;  %1924 = vmatprep.mubr.msk.f32.mxu1 %vm2139_vm1, %v2136_v10 }
 0x179   :  { %1927 = vmatprep.subr.mxu1 %v2136_v10 }
 0x17b   :  { %1925 = vmatmul.mubr.msk.f32.vlgmr.msra.gmra.mrb[2].mxu1 %vm159_vm2, %v2248_v13 }
 0x17c   :  { %1929 = vmatprep.mubr.msk.f32.mxu1 %vm2139_vm1, %v2136_v10 }
 0x1da   :  { %v311_v22 = vpop.permute.xlu0 %310 }
 0x1db   :  { %1928 = vmatpush3.xpose.msk.msra.mxu1 %vm159_vm2, %v311_v22 }
 0x1dc   :  { %1932 = vmatprep.subr.mxu1 %v2136_v10 }
 0x1de   :  { %v387_v23 = vpop.permute.xlu1 %386  ;;  %1930 = vmatmul.mubr.msk.f32.vlgmr.msra.gmra.mrb[4].mxu1 %vm159_vm2, %v2258_v15  ;;  %v463_v24 = vpop.permute.xlu0 %462 }
 0x1df   :  { %1933 = vmatpush3.xpose.msk.msra.mxu1 %vm159_vm2, %v387_v23  ;;  %1938 = vmatpush3.xpose.msk.msra.mxu0 %vm159_vm2, %v463_v24 }
 0x1e0   :  { %1934 = vmatprep.mubr.msk.f32.mxu1 %vm2139_vm1, %v2136_v10  ;;  %1942 = vmatprep.subr.mxu1 %v2136_v10 }
 0x1e1   :  { %1947 = vmatprep.subr.mxu0 %v2136_v10 }
 0x1e2   :  { %v539_v25 = vpop.permute.xlu1 %538  ;;  %1935 = vmatmul.mubr.msk.f32.vlgmr.msra.gmra.mrb[6].mxu1 %vm159_vm2, %v2263_v17  ;;  %1940 = vmatmul.mubr.msk.f32.vlgmr.msra.gmra.mrb[2].mxu0 %vm159_vm2, %v2256_v14  ;;  %v615_v26 = vpop.permute.xlu0 %614 }
 0x1e3   :  { %1943 = vmatpush3.xpose.msk.msra.mxu1 %vm159_vm2, %v539_v25  ;;  %1948 = vmatpush3.xpose.msk.msra.mxu0 %vm159_vm2, %v615_v26 }
 0x1e4   :  { %1944 = vmatprep.mubr.msk.f32.mxu1 %vm2139_vm1, %v2136_v10  ;;  %1949 = vmatprep.mubr.msk.f32.mxu0 %vm2139_vm1, %v2136_v10 }
 0x1e5   :  { %1952 = vmatprep.subr.mxu1 %v2136_v10  ;;  %1957 = vmatprep.subr.mxu0 %v2136_v10 }
 0x1e6   :  { %v691_v27 = vpop.permute.xlu1 %690  ;;  %1945 = vmatmul.mubr.msk.f32.vlgmr.msra.gmra.mrb[8].mxu1 %vm159_vm2, %v2261_v16  ;;  %1950 = vmatmul.mubr.msk.f32.vlgmr.msra.gmra.mrb[4].mxu0 %vm159_vm2, %v2267_v18 }
 0x1e7   :  { %1953 = vmatpush3.xpose.msk.msra.mxu1 %vm159_vm2, %v691_v27  ;;  %1954 = vmatprep.mubr.msk.f32.mxu1 %vm2139_vm1, %v2136_v10 }
 0x1e8   :  { %1962 = vmatprep.subr.mxu1 %v2136_v10  ;;  %1959 = vmatprep.mubr.msk.f32.mxu0 %vm2139_vm1, %v2136_v10 }
 0x1ea   :  { %1955 = vmatmul.mubr.msk.f32.vlgmr.msra.gmra.mrb[10].mxu1 %vm159_vm2, %v2271_v19 }
 0x1eb   :  { %1964 = vmatprep.mubr.msk.f32.mxu1 %vm2139_vm1, %v2136_v10 }
 0x24a   :  { %v230_v28 = vpop.f32.mrb[0].mxu1 }
 0x24b   :  { %v766_v29 = vmul.f32 0.35355338, %v230_v28  ;;  %v1921_v30 = vpop.f32.mrb[1].mxu1 }
 0x24d   :  { %v774_v31 = vsel %vm159_vm2, %v766_v29, -inf }
 0x24e   :  { %775 = vmax.xlane.f32.xlu0 %v774_v31  ;;  %v306_v32 = vpop.f32.mrb[2].mxu1 }
 0x24f   :  { %v767_v33 = vmul.f32 0.35355338, %v306_v32  ;;  %v1926_v34 = vpop.f32.mrb[3].mxu1 }
 0x251   :  { %v777_v35 = vsel %vm159_vm2, %v767_v33, -inf }
 0x252   :  { %778 = vmax.xlane.f32.xlu1 %v777_v35 }
 0x2b1   :  { %v382_v36 = vpop.f32.mrb[4].mxu1 }
 0x2b2   :  { %v768_v37 = vmul.f32 0.35355338, %v382_v36  ;;  %v1931_v38 = vpop.f32.mrb[5].mxu1 }
 0x2b4   :  { %v780_v39 = vsel %vm159_vm2, %v768_v37, -inf }
 0x2b5   :  { %781 = vmax.xlane.f32.xlu0 %v780_v39  ;;  %v458_v40 = vpop.f32.mrb[6].mxu1  ;;  %v534_v41 = vpop.f32.mrb[2].mxu0 }
 0x2b6   :  { %v769_v42 = vmul.f32 0.35355338, %v458_v40  ;;  %v770_v43 = vmul.f32 0.35355338, %v534_v41  ;;  %v1936_v44 = vpop.f32.mrb[7].mxu1  ;;  %v1941_v45 = vpop.f32.mrb[3].mxu0 }
 0x2b8   :  { %v783_v46 = vsel %vm159_vm2, %v769_v42, -inf  ;;  %v786_v47 = vsel %vm159_vm2, %v770_v43, -inf }
 0x2b9   :  { %784 = vmax.xlane.f32.xlu0 %v783_v46  ;;  %v610_v48 = vpop.f32.mrb[8].mxu1  ;;  %787 = vmax.xlane.f32.xlu1 %v786_v47  ;;  %v686_v49 = vpop.f32.mrb[4].mxu0 }
 0x2ba   :  { %v771_v50 = vmul.f32 0.35355338, %v610_v48  ;;  %v772_v51 = vmul.f32 0.35355338, %v686_v49  ;;  %v1946_v52 = vpop.f32.mrb[9].mxu1  ;;  %v1951_v53 = vpop.f32.mrb[5].mxu0 }
 0x2bc   :  { %v789_v54 = vsel %vm159_vm2, %v771_v50, -inf  ;;  %v792_v55 = vsel %vm159_vm2, %v772_v51, -inf }
 0x2bd   :  { %790 = vmax.xlane.f32.xlu0 %v789_v54  ;;  %v762_v56 = vpop.f32.mrb[10].mxu1  ;;  %793 = vmax.xlane.f32.xlu1 %v792_v55 }
 0x2be   :  { %v773_v57 = vmul.f32 0.35355338, %v762_v56  ;;  %v1956_v58 = vpop.f32.mrb[11].mxu1 }
 0x2c0   :  { %v795_v59 = vsel %vm159_vm2, %v773_v57, -inf }
 0x2c1   :  { %796 = vmax.xlane.f32.xlu0 %v795_v59 }
 0x2ce   :  { %862 = vrot.lane.b32.xlu1 %v2240_v12, %s2142_s20 }
 0x2d2   :  { %1014 = vrot.lane.b32.xlu1 %v2258_v15, %s2142_s20 }
 0x2d6   :  { %1090 = vrot.lane.b32.xlu1 %v2263_v17, %s2142_s20 }
 0x2d7   :  { %938 = vrot.lane.b32.xlu0 %v2248_v13, %s2142_s20 }
 0x2da   :  { %1242 = vrot.lane.b32.xlu1 %v2261_v16, %s2142_s20 }
 0x2db   :  { %1166 = vrot.lane.b32.xlu0 %v2256_v14, %s2142_s20  ;;  %v776_v62 = vpop.xlane.xlu0 %775 }
 0x2dc   :  { %v798_v63 = vsub.f32 %v766_v29, %v776_v62 }
 0x2de   :  { %v806_v1 = vmul.f32 1.442695, %v798_v63 }
 0x2df   :  { %v779_v60 = vpop.xlane.xlu1 %778 }
 0x2e0   :  { %v799_v61 = vsub.f32 %v767_v33, %v779_v60 }
 0x2e2   :  { %v808_v0 = vmul.f32 1.442695, %v799_v61 }
 0x2e4   :  { %2039 = vpow2.f32 %v808_v0 }
 0x2e5   :  { %2041 = vpow2.f32 %v806_v1 }
 0x2ee   :  { %v2342_v2 = vpop.eup %2039 }
 0x2ef   :  { %v825_v3 = vsel %vm159_vm2, %v2342_v2, 0.0  ;;  %v2346_v4 = vpop.eup %2041 }
 0x2f0   :  { %v822_v5 = vsel %vm159_vm2, %v2346_v4, 0.0 }
 0x2fa   :  { %826 = vadd.xlane.f32.xlu0 %v825_v3 }
 0x2fe   :  { %823 = vadd.xlane.f32.xlu1 %v822_v5 }
 0x342   :  { %v782_v6 = vpop.xlane.xlu0 %781 }
 0x343   :  { %v800_v7 = vsub.f32 %v768_v37, %v782_v6 }
 0x345   :  { %v810_v8 = vmul.f32 1.442695, %v800_v7 }
 0x346   :  { %v788_v9 = vpop.xlane.xlu1 %787  ;;  %v785_v11 = vpop.xlane.xlu0 %784 }
 0x347   :  { %2043 = vpow2.f32 %v810_v8  ;;  %v802_v12 = vsub.f32 %v770_v43, %v788_v9  ;;  %v801_v13 = vsub.f32 %v769_v42, %v785_v11 }
 0x349   :  { %v814_v14 = vmul.f32 1.442695, %v802_v12  ;;  %v812_v15 = vmul.f32 1.442695, %v801_v13 }
 0x34a   :  { %v794_v16 = vpop.xlane.xlu1 %793  ;;  %v791_v17 = vpop.xlane.xlu0 %790 }
 0x34b   :  { %2045 = vpow2.f32 %v814_v14  ;;  %v804_v20 = vsub.f32 %v772_v51, %v794_v16  ;;  %v803_v21 = vsub.f32 %v771_v50, %v791_v17 }
 0x34c   :  { %2047 = vpow2.f32 %v812_v15 }
 0x34d   :  { %v818_v22 = vmul.f32 1.442695, %v804_v20  ;;  %v816_v23 = vmul.f32 1.442695, %v803_v21 }
 0x34e   :  { %v863_v24 = vpop.permute.xlu1 %862  ;;  %v797_v25 = vpop.xlane.xlu0 %796 }
 0x34f   :  { %2049 = vpow2.f32 %v818_v22  ;;  %v805_v26 = vsub.f32 %v773_v57, %v797_v25  ;;  %1958 = vmatpush3.msra.mxu0 %v863_v24 }
 0x350   :  { %2051 = vpow2.f32 %v816_v23  ;;  %1967 = vmatprep.subr.mxu0 %v2136_v10 }
 0x351   :  { %v2044_v27 = vpop.eup %2043  ;;  %v820_v28 = vmul.f32 1.442695, %v805_v26 }
 0x352   :  { %v939_v29 = vpop.permute.xlu0 %938  ;;  %v828_v30 = vsel %vm159_vm2, %v2044_v27, 0.0  ;;  %v1015_v41 = vpop.permute.xlu1 %1014 }
 0x353   :  { %2053 = vpow2.f32 %v820_v28  ;;  %829 = vadd.xlane.f32.xlu1 %v828_v30  ;;  %1963 = vmatpush3.msra.mxu1 %v939_v29 }
 0x354   :  { %1972 = vmatprep.subr.mxu1 %v2136_v10 }
 0x355   :  { %v2046_v31 = vpop.eup %2045 }
 0x356   :  { %v2048_v32 = vpop.eup %2047  ;;  %v834_v33 = vsel %vm159_vm2, %v2046_v31, 0.0  ;;  %v1091_v42 = vpop.permute.xlu1 %1090 }
 0x357   :  { %835 = vadd.xlane.f32.xlu1 %v834_v33  ;;  %v831_v34 = vsel %vm159_vm2, %v2048_v32, 0.0  ;;  %v1167_v43 = vpop.permute.xlu0 %1166 }
 0x358   :  { %832 = vadd.xlane.f32.xlu0 %v831_v34 }
 0x359   :  { %v2050_v35 = vpop.eup %2049 }
 0x35a   :  { %v2052_v36 = vpop.eup %2051  ;;  %v840_v37 = vsel %vm159_vm2, %v2050_v35, 0.0  ;;  %v1243_v44 = vpop.permute.xlu1 %1242 }
 0x35b   :  { %841 = vadd.xlane.f32.xlu1 %v840_v37  ;;  %v837_v38 = vsel %vm159_vm2, %v2052_v36, 0.0 }
 0x35c   :  { %838 = vadd.xlane.f32.xlu0 %v837_v38 }
 0x35d   :  { %v2357_v39 = vpop.eup %2053 }
 0x35e   :  { %v843_v40 = vsel %vm159_vm2, %v2357_v39, 0.0 }
 0x360   :  { %844 = vadd.xlane.f32.xlu0 %v843_v40 }
 0x36c   :  { %1394 = vrot.lane.b32.xlu1 %v2271_v19, %s2142_s20 }
 0x376   :  { %1318 = vrot.lane.b32.xlu0 %v2267_v18, %s2142_s20 }
 0x387   :  { %v827_v45 = vpop.xlane.xlu0 %826 }
 0x388   :  { %2055 = vrcp.f32 %v827_v45 }
 0x38b   :  { %v824_v46 = vpop.xlane.xlu1 %823 }
 0x38c   :  { %2057 = vrcp.f32 %v824_v46 }
 0x392   :  { %v2056_v47 = vpop.eup %2055 }
 0x393   :  { %v855_v48 = vmul.f32 %v2056_v47, %v2342_v2  ;;  %v1547_v47 = vld [vmem:[%s2468_s5] sm:$0xff] }
 0x395   :  { %1965 = vmatmul.mubr.msk.f32.vlgmr.msra.gmra.mrb[12].mxu1 %vm159_vm2, %v855_v48  ;;  %v1548_v48 = vld [vmem:[%s2468_s5 + $0x8] sm:$0xff] }
 0x396   :  { %v2058_v49 = vpop.eup %2057  ;;  %1973 = vmatpush3.msra.mxu1 %v1091_v42  ;;  %1974 = vmatprep.mubr.msk.f32.mxu1 %vm2139_vm1, %v2136_v10 }
 0x397   :  { %v854_v18 = vmul.f32 %v2058_v49, %v2346_v4  ;;  %1982 = vmatprep.subr.mxu1 %v2136_v10  ;;  %v2016_v49 = vpack.c.bf16 %v1548_v48, %v1547_v47 }
 0x399   :  { %1960 = vmatmul.mubr.msk.f32.vlgmr.msra.gmra.mrb[6].mxu0 %vm159_vm2, %v854_v18  ;;  %v1549_v18 = vld [vmem:[%s2468_s5 + $0x10] sm:$0xff] }
 0x39a   :  { %1968 = vmatpush3.msra.mxu0 %v1015_v41  ;;  %1969 = vmatprep.mubr.msk.f32.mxu0 %vm2139_vm1, %v2136_v10 }
 0x39b   :  { %1977 = vmatprep.subr.mxu0 %v2136_v10 }
 0x3e0   :  { %v830_v19 = vpop.xlane.xlu1 %829 }
 0x3e1   :  { %2059 = vrcp.f32 %v830_v19  ;;  %v1550_v19 = vld [vmem:[%s2468_s5 + $0x18] sm:$0xff] }
 0x3e4   :  { %v836_v50 = vpop.xlane.xlu1 %835 }
 0x3e5   :  { %2061 = vrcp.f32 %v836_v50  ;;  %v833_v51 = vpop.xlane.xlu0 %832  ;;  %v2020_v50 = vpack.c.bf16 %v1550_v19, %v1549_v18 }
 0x3e6   :  { %2063 = vrcp.f32 %v833_v51 }
 0x3e8   :  { %v842_v52 = vpop.xlane.xlu1 %841 }
 0x3e9   :  { %2065 = vrcp.f32 %v842_v52  ;;  %v839_v53 = vpop.xlane.xlu0 %838 }
 0x3ea   :  { %2067 = vrcp.f32 %v839_v53 }
 0x3eb   :  { %v2060_v54 = vpop.eup %2059 }
 0x3ec   :  { %v856_v55 = vmul.f32 %v2060_v54, %v2044_v27  ;;  %v1395_v2 = vpop.permute.xlu1 %1394 }
 0x3ed   :  { %v845_v56 = vpop.xlane.xlu0 %844 }
 0x3ee   :  { %2069 = vrcp.f32 %v845_v56  ;;  %1970 = vmatmul.mubr.msk.f32.vlgmr.msra.gmra.mrb[8].mxu0 %vm159_vm2, %v856_v55 }
 0x3ef   :  { %v2062_v57 = vpop.eup %2061  ;;  %1978 = vmatpush3.msra.mxu0 %v1167_v43  ;;  %1979 = vmatprep.mubr.msk.f32.mxu0 %vm2139_vm1, %v2136_v10 }
 0x3f0   :  { %v2064_v58 = vpop.eup %2063  ;;  %v858_v59 = vmul.f32 %v2062_v57, %v2046_v31  ;;  %1987 = vmatprep.subr.mxu0 %v2136_v10 }
 0x3f1   :  { %v857_v60 = vmul.f32 %v2064_v58, %v2048_v32  ;;  %v1319_v61 = vpop.permute.xlu0 %1318  ;;  %v1854_v58 = vld [vmem:[%s2466_s3] ss:$0 sm:$0xff] }
 0x3f2   :  { %1980 = vmatmul.mubr.msk.f32.vlgmr.msra.gmra.mrb[10].mxu0 %vm159_vm2, %v858_v59 }
 0x3f3   :  { %v2066_v62 = vpop.eup %2065  ;;  %1975 = vmatmul.mubr.msk.f32.vlgmr.msra.gmra.mrb[14].mxu1 %vm159_vm2, %v857_v60  ;;  %1988 = vmatpush3.msra.mxu0 %v1319_v61  ;;  %v1855_v60 = vld [vmem:[#allocation2] ss:$0 sm:$0xff] }
 0x3f4   :  { %v2068_v63 = vpop.eup %2067  ;;  %v860_v0 = vmul.f32 %v2066_v62, %v2050_v35  ;;  %1983 = vmatpush3.msra.mxu1 %v1243_v44  ;;  %1984 = vmatprep.mubr.msk.f32.mxu1 %vm2139_vm1, %v2136_v10 }
 0x3f5   :  { %v859_v1 = vmul.f32 %v2068_v63, %v2052_v36  ;;  %1989 = vmatprep.mubr.msk.f32.mxu0 %vm2139_vm1, %v2136_v10  ;;  %1992 = vmatprep.subr.mxu1 %v2136_v10 }
 0x3f6   :  { %1990 = vmatmul.mubr.msk.f32.vlgmr.msra.gmra.mrb[12].mxu0 %vm159_vm2, %v860_v0  ;;  %2017 = vmatprep.subr.bf16.mxu0 %v2016_v49 }
 0x3f7   :  { %1985 = vmatmul.mubr.msk.f32.vlgmr.msra.gmra.mrb[16].mxu1 %vm159_vm2, %v859_v1  ;;  %2019 = vmatpush3.bf16.msra.mxu0 %v2016_v49 }
 0x3f8   :  { %v2070_v3 = vpop.eup %2069  ;;  %1993 = vmatpush3.msra.mxu1 %v1395_v2  ;;  %1994 = vmatprep.mubr.msk.f32.mxu1 %vm2139_vm1, %v2136_v10 }
 0x3f9   :  { %v861_v4 = vmul.f32 %v2070_v3, %v2357_v39  ;;  %2021 = vmatprep.subr.bf16.mxu0 %v2020_v50  ;;  %v1856_v3 = vld [vmem:[%s2469_s6] ss:$0 sm:$0xff] }
 0x3fb   :  { %1995 = vmatmul.mubr.msk.f32.vlgmr.msra.gmra.mrb[18].mxu1 %vm159_vm2, %v861_v4  ;;  %2023 = vmatpush3.bf16.msra.mxu0 %v2020_v50 }
 0x468   :  { %v1010_v5 = vpop.f32.mrb[12].mxu1 }
 0x469   :  { %v1966_v6 = vpop.f32.mrb[13].mxu1 }
 0x46c   :  { %v934_v7 = vpop.f32.mrb[6].mxu0 }
 0x46d   :  { %v1961_v8 = vpop.f32.mrb[7].mxu0 }
 0x46e   :  { %v1859_v8 = vld [vmem:[%s2470_s7] ss:$0 sm:$0xff] }
 0x4c1   :  { %v1086_v9 = vpop.f32.mrb[8].mxu0 }
 0x4c2   :  { %v1971_v11 = vpop.f32.mrb[9].mxu0  ;;  %1472 = vrot.lane.b32.xlu0 %v1086_v9, %s2143_s21 }
 0x4c5   :  { %v1238_v12 = vpop.f32.mrb[10].mxu0 }
 0x4c6   :  { %v1162_v13 = vpop.f32.mrb[14].mxu1  ;;  %1480 = vrot.lane.b32.xlu0 %v1238_v12, %s2144_s22  ;;  %v1981_v14 = vpop.f32.mrb[11].mxu0 }
 0x4c7   :  { %1474 = vrot.lane.b32.xlu1 %v1162_v13, %s2143_s21  ;;  %v1976_v15 = vpop.f32.mrb[15].mxu1 }
 0x4c9   :  { %v1390_v10 = vpop.f32.mrb[12].mxu0 }
 0x4ca   :  { %v1314_v16 = vpop.f32.mrb[16].mxu1  ;;  %1488 = vrot.lane.b32.xlu0 %v1390_v10, %s2145_s23  ;;  %v1991_v17 = vpop.f32.mrb[13].mxu0  ;;  %v1658_v10 = vlaneseq }
 0x4cb   :  { %1482 = vrot.lane.b32.xlu1 %v1314_v16, %s2144_s22  ;;  %v1986_v20 = vpop.f32.mrb[17].mxu1 }
 0x4cc   :  { %v1659_v16 = vand.u32 127, %v1658_v10  ;;  %v1661_v17 = vshrl.u32 %v1658_v10, 7 }
 0x4ce   :  { %v1466_v21 = vpop.f32.mrb[18].mxu1  ;;  %v1662_v20 = vsub.s32 %v1659_v16, %v1661_v17 }
 0x4cf   :  { %1490 = vrot.lane.b32.xlu1 %v1466_v21, %s2145_s23  ;;  %v1996_v22 = vpop.f32.mrb[19].mxu1 }
 0x534   :  { %v1473_v23 = vpop.permute.xlu0 %1472 }
 0x535   :  { %v1494_v26 = vsel %vm159_vm2, %v934_v7, %v1473_v23 }
 0x538   :  { %v1481_v24 = vpop.permute.xlu0 %1480 }
 0x539   :  { %v1475_v25 = vpop.permute.xlu1 %1474  ;;  %v1497_v27 = vsel %vm1496_vm3, %v1494_v26, %v1481_v24 }
 0x53a   :  { %v1495_v32 = vsel %vm159_vm2, %v1010_v5, %v1475_v25 }
 0x53c   :  { %v1489_v28 = vpop.permute.xlu0 %1488 }
 0x53d   :  { %v1483_v29 = vpop.permute.xlu1 %1482  ;;  %v1500_v30 = vsel %vm1499_vm4, %v1497_v27, %v1489_v28  ;;  %v2146_v27 = vmov 0   ;;  %v1678_v28 = vsub.s32 0, %v1661_v17 }
 0x53e   :  { %v1504_v31 = vsel %vm61_vm0, %v1500_v30, 0.0  ;;  %v1498_v33 = vsel %vm1496_vm3, %v1495_v32, %v1483_v29  ;;  %2038 = vset.pattern.permute.xlu1 %v2146_v27  ;;  %2037 = vset.pattern.permute.xlu0 %v2146_v27  ;;  %v1682_v29 = vsub.s32 1, %v1661_v17  ;;  %v1861_v27 = vld [vmem:[%s2472_s9] ss:$0 sm:$0xff] }
 0x53f   :  { %1505 = vadd.xlane.f32.xlu0 %v1504_v31 }
 0x541   :  { %v1491_v34 = vpop.permute.xlu1 %1490 }
 0x542   :  { %v1501_v35 = vsel %vm1499_vm4, %v1498_v33, %v1491_v34 }
 0x543   :  { %v1507_v36 = vsel %vm61_vm0, %v1501_v35, 0.0 }
 0x544   :  { %1508 = vadd.xlane.f32.xlu1 %v1507_v36 }
 0x5cc   :  { %v1506_v37 = vpop.xlane.xlu0 %1505 }
 0x5cd   :  { %v1511_v38 = vmul.f32 0.03125, %v1506_v37 }
 0x5cf   :  { %v1513_v39 = vsub.f32 %v1500_v30, %v1511_v38 }
 0x5d1   :  { %v1509_v40 = vpop.xlane.xlu1 %1508  ;;  %v1515_v41 = vmul.f32 %v1513_v39, %v1513_v39 }
 0x5d2   :  { %v1512_v42 = vmul.f32 0.03125, %v1509_v40 }
 0x5d3   :  { %v1517_v43 = vsel %vm61_vm0, %v1515_v41, 0.0 }
 0x5d4   :  { %v1514_v44 = vsub.f32 %v1501_v35, %v1512_v42  ;;  %1518 = vadd.xlane.f32.xlu0 %v1517_v43 }
 0x5d6   :  { %v1516_v45 = vmul.f32 %v1514_v44, %v1514_v44 }
 0x5d8   :  { %v1520_v46 = vsel %vm61_vm0, %v1516_v45, 0.0 }
 0x5d9   :  { %1521 = vadd.xlane.f32.xlu0 %v1520_v46 }
 0x661   :  { %v1519_v51 = vpop.xlane.xlu0 %1518 }
 0x662   :  { %v1523_v52 = vmul.f32 0.03125, %v1519_v51 }
 0x664   :  { %v1525_v53 = vadd.f32 1e-05, %v1523_v52 }
 0x666   :  { %2071 = vrsqrt.f32 %v1525_v53  ;;  %v1522_v54 = vpop.xlane.xlu0 %1521 }
 0x667   :  { %v1524_v55 = vmul.f32 0.03125, %v1522_v54 }
 0x669   :  { %v1526_v56 = vadd.f32 1e-05, %v1524_v55 }
 0x66b   :  { %2073 = vrsqrt.f32 %v1526_v56 }
 0x670   :  { %v2072_v57 = vpop.eup %2071 }
 0x671   :  { %v1529_v59 = vmul.f32 %v2072_v57, %v1513_v39 }
 0x673   :  { %v1537_v61 = vmul.f32 %v1854_v58, %v1529_v59 }
 0x675   :  { %v2074_v62 = vpop.eup %2073  ;;  %v2415_v63 = vadd.f32 %v1855_v60, %v1537_v61 }
 0x676   :  { %v1530_v0 = vmul.f32 %v2074_v62, %v1514_v44 }
 0x677   :  { %2005 = vmatprep.mubr.msk.f32.mxu0 %vm61_vm0, %v2415_v63 }
 0x678   :  { %v1538_v1 = vmul.f32 %v1854_v58, %v1530_v0 }
 0x67a   :  { %v2419_v2 = vadd.f32 %v1855_v60, %v1538_v1 }
 0x67c   :  { %2006 = vmatmul.mubr.msk.f32.vlgmr.msra.gmra.mrb[14].mxu0 %vm61_vm0, %v2419_v2 }
 0x74f   :  { %v2007_v4 = vpop.f32.mrb[14].mxu0 }
 0x750   :  { %v1636_v5 = vadd.f32 %v2007_v4, %v1856_v3  ;;  %v1630_v6 = vpop.f32.mrb[15].mxu0 }
 0x751   :  { %v1631_v7 = vadd.f32 %v1856_v3, %v1630_v6 }
 0x752   :  { %2075 = vtanh.f32 %v1636_v5 }
 0x753   :  { %2077 = vtanh.f32 %v1631_v7 }
 0x75c   :  { %v2076_v9 = vpop.eup %2075 }
 0x75d   :  { %v2078_v11 = vpop.eup %2077  ;;  %v1649_v12 = vmul.f32 %v2076_v9, %v1859_v8 }
 0x75e   :  { %v1648_v13 = vmul.f32 %v2078_v11, %v1859_v8 }
 0x75f   :  { %v1653_v14 = vsel %vm1496_vm3, %v1649_v12, 0.0 }
 0x760   :  { %1654 = vadd.xlane.f32.xlu0 %v1653_v14  ;;  %v1650_v15 = vsel %vm1496_vm3, %v1648_v13, 0.0 }
 0x761   :  { %1651 = vadd.xlane.f32.xlu1 %v1650_v15 }
 0x7ed   :  { %v1655_v21 = vpop.xlane.xlu0 %1654 }
 0x7ee   :  { %v1667_v22 = vrot.slane %v1655_v21, %v1662_v20  ;;  %v1652_v23 = vpop.xlane.xlu1 %1651 }
 0x7ef   :  { %v1663_v24 = vrot.slane %v1652_v23, %v1662_v20 }
 0x7f1   :  { %v1669_v25 = vsel %vm1668_vm5, %v1667_v22, %v1663_v24 }
 0x7f2   :  { %v1672_v26 = vsel %vm1671_vm6, %v1669_v25, -inf }
 0x7f3   :  { %1673 = vmax.xlane.f32.xlu1 %v1672_v26 }
 0x880   :  { %v1674_v30 = vpop.xlane.xlu1 %1673 }
 0x881   :  { %v1679_v31 = vrot.slane %v1674_v30, %v1678_v28  ;;  %v1683_v32 = vrot.slane %v1674_v30, %v1682_v29 }
 0x883   :  { %v1686_v33 = vsub.f32 %v1652_v23, %v1679_v31  ;;  %v1687_v34 = vsub.f32 %v1655_v21, %v1683_v32  ;;  %v1860_v23 = vld [vmem:[%s2471_s8] ss:$0 sm:$0xff] }
 0x885   :  { %v1688_v35 = vmul.f32 1.442695, %v1686_v33  ;;  %v1690_v36 = vmul.f32 1.442695, %v1687_v34 }
 0x887   :  { %2079 = vpow2.f32 %v1688_v35 }
 0x888   :  { %2081 = vpow2.f32 %v1690_v36 }
 0x891   :  { %v2080_v37 = vpop.eup %2079 }
 0x892   :  { %v2082_v38 = vpop.eup %2081  ;;  %1695 = vperm.xlu0 %2037, %v2080_v37  }
 0x893   :  { %1698 = vperm.xlu1 %2038, %v2082_v38  }
 0x911   :  { %v1696_v39 = vpop.permute.xlu0 %1695 }
 0x912   :  { %v1699_v40 = vpop.permute.xlu1 %1698  ;;  %v1703_v41 = vrot.slane %v1696_v39, %v1662_v20 }
 0x913   :  { %v1707_v42 = vrot.slane %v1699_v40, %v1662_v20 }
 0x915   :  { %v1708_v43 = vsel %vm1668_vm5, %v1707_v42, %v1703_v41 }
 0x916   :  { %v1710_v44 = vsel %vm1671_vm6, %v1708_v43, 0.0 }
 0x917   :  { %1711 = vadd.xlane.f32.xlu1 %v1710_v44 }
 0x9a4   :  { %v1712_v45 = vpop.xlane.xlu1 %1711 }
 0x9a5   :  { %2083 = vrcp.f32 %v1712_v45 }
 0x9af   :  { %v2084_v46 = vpop.eup %2083 }
 0x9b0   :  { %v1719_v47 = vrot.slane %v2084_v46, %v1678_v28  ;;  %v1723_v49 = vrot.slane %v2084_v46, %v1682_v29 }
 0x9b2   :  { %v1726_v48 = vmul.f32 %v2080_v37, %v1719_v47  ;;  %v1727_v18 = vmul.f32 %v2082_v38, %v1723_v49 }
 0x9b4   :  { %1730 = vperm.xlu0 %2037, %v1726_v48  }
 0x9b8   :  { %1735 = vperm.xlu0 %2037, %v1727_v18  }
 0xa33   :  { %v1731_v19 = vpop.permute.xlu0 %1730 }
 0xa34   :  { %v1738_v50 = vmul.f32 %v1731_v19, %v2415_v63 }
 0xa36   :  { %v1740_v51 = vsel %vm61_vm0, %v1738_v50, 0.0 }
 0xa37   :  { %v1741_v52 = vrot.slane %v1740_v51, 4  ;;  %v1736_v53 = vpop.permute.xlu0 %1735 }
 0xa38   :  { %v1739_v54 = vmul.f32 %v1736_v53, %v2419_v2 }
 0xa39   :  { %v1742_v55 = vadd.f32 %v1741_v52, %v1740_v51 }
 0xa3a   :  { %v1747_v56 = vsel %vm61_vm0, %v1739_v54, 0.0 }
 0xa3b   :  { %v1743_v57 = vrot.slane %v1742_v55, 2  ;;  %v1748_v58 = vrot.slane %v1747_v56, 4 }
 0xa3d   :  { %v1744_v59 = vadd.f32 %v1743_v57, %v1742_v55  ;;  %v1749_v60 = vadd.f32 %v1748_v58, %v1747_v56 }
 0xa3f   :  { %v1750_v61 = vrot.slane %v1749_v60, 2  ;;  %v1745_v62 = vrot.slane %v1744_v59, 1 }
 0xa41   :  { %v1751_v0 = vadd.f32 %v1750_v61, %v1749_v60  ;;  %v1746_v3 = vadd.f32 %v1745_v62, %v1744_v59 }
 0xa43   :  { %v1752_v1 = vrot.slane %v1751_v0, 1 }
 0xa45   :  { %v1753_v4 = vadd.f32 %v1752_v1, %v1751_v0 }
 0xa47   :  { %v1758_v63 = vsel %vm1668_vm5, %v1753_v4, %v1746_v3 }
 0xa48   :  { %v1761_v5 = vsel %vm1760_vm7, %v1758_v63, 0.0 }
 0xa49   :  { %1762 = vadd.xlane.f32.xlu0 %v1761_v5 }
 0xad6   :  { %v1763_v2 = vpop.xlane.xlu0 %1762 }
 0xad7   :  { %v1764_v6 = vmul.f32 0.03125, %v1763_v2 }
 0xad9   :  { %v1766_v7 = vrot.slane %v1764_v6, 1  ;;  %v1769_v8 = vsub.f32 %v1746_v3, %v1764_v6 }
 0xadb   :  { %v1770_v9 = vsub.f32 %v1753_v4, %v1766_v7  ;;  %v1771_v12 = vmul.f32 %v1769_v8, %v1769_v8 }
 0xadd   :  { %v1772_v11 = vmul.f32 %v1770_v9, %v1770_v9 }
 0xadf   :  { %v1775_v13 = vrot.slane %v1772_v11, 7 }
 0xae1   :  { %v1776_v14 = vsel %vm1668_vm5, %v1775_v13, %v1771_v12 }
 0xae2   :  { %v1778_v15 = vsel %vm1760_vm7, %v1776_v14, 0.0 }
 0xae3   :  { %1779 = vadd.xlane.f32.xlu1 %v1778_v15 }
 0xb70   :  { %v1780_v10 = vpop.xlane.xlu1 %1779 }
 0xb71   :  { %v1781_v16 = vmul.f32 0.03125, %v1780_v10 }
 0xb73   :  { %v1782_v17 = vadd.f32 1e-05, %v1781_v16 }
 0xb75   :  { %2085 = vrsqrt.f32 %v1782_v17 }
 0xb7f   :  { %v2086_v20 = vpop.eup %2085 }
 0xb80   :  { %v1785_v21 = vrot.slane %v2086_v20, 1  ;;  %v1788_v22 = vmul.f32 %v2086_v20, %v1769_v8 }
 0xb82   :  { %v1789_v24 = vmul.f32 %v1785_v21, %v1770_v9  ;;  %v1796_v25 = vmul.f32 %v1860_v23, %v1788_v22 }
 0xb84   :  { %v1797_v26 = vmul.f32 %v1860_v23, %v1789_v24  ;;  %v1804_v29 = vadd.f32 %v1861_v27, %v1796_v25 }
 0xb86   :  { %v1805_v28 = vadd.f32 %v1861_v27, %v1797_v26 }
 0xb88   :  { %v1808_v30 = vrot.slane %v1805_v28, 7 }
 0xb8a   :  { %v1809_v31 = vsel %vm1668_vm5, %v1808_v30, %v1804_v29 }
 0xb8b   :  { %1811 = vst.msk [vmem:[#allocation5] sm:$0x3] %vm1760_vm7, %v1809_v31 }
 0xb8c   :  { %2120 = shalt.err (!%p2117_p12)
}
 0xb8d   :  { %s2121_s9 = scalar_lea.hbm %s2473_s10, 32 }
 0xb8e   :  { %p2122_p13 = scmp.ne.s32.totalorder %s2473_s10, %s2121_s9  ;;  %p2125_p0 = scmp.lt.u32.totalorder %s2121_s9, %s2473_s10 }
 0xb90   :  { %p2127_p1 = pnand %p2125_p0, %p2122_p13 }
 0xb92   :  { %2130 = shalt.err (!%p2127_p1)
}
 0xb93   :  { %1821 = dma.vmem_to_hbm [thread:$0]  %s1819_s18, 32, %s2473_s10, [#allocation4]  }
 0xb94   :  { %2133 = dma.done.wait [#allocation4], 32  }
 0xb95   :  { %2134 = vsyncadd [#allocation4], 4294967264 }
 0xb96   :  { %1825 = vsyncpa [#allocation3], 1 }
 0xb97   :  { %1826 = vsyncpa [#allocation4], 1 }

</bundles_post_ra>
